<compile_context>
chip_gen: v5e
topology: v5e:2x2
jax: 0.10.0
libtpu: 0.0.40
codegen_flags: <defaults>
</compile_context>

<pallas_src>
import functools

import jax
import jax.numpy as jnp
import numpy as np
from jax.experimental import pallas as pl
from jax.experimental.pallas import tpu as pltpu


_MXU_DTYPES = (np.dtype(np.float32), np.dtype(jnp.bfloat16))


def _nearest_sel_matrix(in_size, out_size, dtype, *, out_first):
    """One-hot nearest-neighbor selection matrix built in-kernel from iota.

    Entry is 1 where  src == floor(dst * in_size / out_size)  (PyTorch legacy
    mode='nearest'), expressed division-free as
        src * out_size <= dst * in_size < (src + 1) * out_size.

    out_first=True  -> shape (out_size, in_size)  (row selector, used as LHS)
    out_first=False -> shape (in_size, out_size)  (col selector, used as RHS;
                        pre-oriented so no in-kernel transpose is needed)
    """
    if out_first:
        shape, dst_dim, src_dim = (out_size, in_size), 0, 1
    else:
        shape, dst_dim, src_dim = (in_size, out_size), 1, 0
    dst = jax.lax.broadcasted_iota(jnp.int32, shape, dst_dim)
    src = jax.lax.broadcasted_iota(jnp.int32, shape, src_dim)
    lo = src * out_size
    di = dst * in_size
    hit = jnp.logical_and(lo <= di, di < lo + out_size)
    return hit.astype(dtype)


def _interp_kernel(x_ref, o_ref):
    # x_ref: (Cb, H_in,  W_in)   -- channel-batched block of input planes
    # o_ref: (Cb, H_out, W_out)
    Cb, H_in, W_in = x_ref.shape
    _, H_out, W_out = o_ref.shape

    # Keep native low-precision float dtype into the MXU; 0/1 selection
    # weights keep bf16 exact.  Anything else falls back to f32 compute.
    cdt = x_ref.dtype if np.dtype(x_ref.dtype) in _MXU_DTYPES else jnp.float32
    x = x_ref[...].astype(cdt)                                  # (Cb,H_in,W_in)

    # ---- column (W) selection: batched matmul over the channel block -------
    col_sel = _nearest_sel_matrix(W_in, W_out, cdt, out_first=False)  # (W_in,W_out)
    col_sel_b = jnp.broadcast_to(col_sel[None], (Cb, W_in, W_out))
    y = jnp.einsum('chw,cwv->chv', x, col_sel_b,
                   preferred_element_type=jnp.float32).astype(cdt)   # (Cb,H_in,W_out)

    # ---- row (H) selection: batched matmul over the channel block ----------
    row_sel = _nearest_sel_matrix(H_in, H_out, cdt, out_first=True)   # (H_out,H_in)
    row_sel_b = jnp.broadcast_to(row_sel[None], (Cb, H_out, H_in))
    out = jnp.einsum('coh,chv->cov', row_sel_b, y,
                     preferred_element_type=jnp.float32)             # (Cb,H_out,W_out)

    o_ref[...] = out.astype(o_ref.dtype)


def _pick_channel_block(num_planes, plane_in_elems, plane_out_elems, itemsize,
                        vmem_budget_bytes=8 * 1024 * 1024):
    """Largest divisor of num_planes whose double-buffered in+out block fits a
    generation-safe VMEM budget (works under v7x's smaller scoped VMEM too);
    prefers >= 2 grid steps so both v7x TensorCores get work."""
    per_plane = 2 * (plane_in_elems + plane_out_elems) * itemsize
    max_cb = max(1, int(vmem_budget_bytes // max(per_plane, 1)))
    divs = [d for d in range(1, num_planes + 1)
            if num_planes % d == 0 and d <= max_cb]
    if not divs:
        return 1
    cb = max(divs)
    if cb == num_planes and num_planes >= 2:
        smaller = [d for d in divs if d < num_planes]
        if smaller:
            cb = max(smaller)
    return cb


@functools.partial(jax.jit, static_argnames=("out_shape",))
def interpolate_nearest(x, out_shape):
    """Nearest-neighbor resize of NCHW `x` to spatial size `out_shape`."""
    N, C, H_in, W_in = x.shape
    H_out, W_out = out_shape
    P = N * C
    itemsize = x.dtype.itemsize

    Cb = _pick_channel_block(P, H_in * W_in, H_out * W_out, itemsize)
    grid = (P // Cb,)

    x3 = x.reshape(P, H_in, W_in)       # free reshape: collapses leading dims

    bytes_accessed = int(P * (H_in * W_in + H_out * W_out) * itemsize)
    out3 = pl.pallas_call(
        _interp_kernel,
        out_shape=jax.ShapeDtypeStruct((P, H_out, W_out), x.dtype),
        grid_spec=pltpu.PrefetchScalarGridSpec(
            num_scalar_prefetch=0,
            grid=grid,
            in_specs=[pl.BlockSpec((Cb, H_in, W_in), lambda g: (g, 0, 0))],
            out_specs=pl.BlockSpec((Cb, H_out, W_out), lambda g: (g, 0, 0)),
        ),
        compiler_params=pltpu.CompilerParams(
            dimension_semantics=("parallel",)),
        cost_estimate=pl.CostEstimate(
            flops=0, transcendentals=0, bytes_accessed=bytes_accessed),
    )(x3)
    return out3.reshape(N, C, H_out, W_out)


class Interpolate:
    """Pallas equivalent of the PyTorch `Interpolate` module (mode='nearest')."""

    def __init__(self, out_shape, mode='nearest'):
        if mode != 'nearest':
            # TODO(synk): bilinear/bicubic interpolation modes not implemented.
            raise NotImplementedError("only mode='nearest' is implemented")
        if isinstance(out_shape, int):
            out_shape = (out_shape, out_shape)
        self.out_shape = tuple(int(s) for s in out_shape)

    def __call__(self, x):
        return interpolate_nearest(x, self.out_shape)


if __name__ == "__main__":
    key = jax.random.PRNGKey(0)
    N, C, H, W = 2, 4, 16, 16
    out_shape = (32, 32)                     # Interpolate(out_shape=(32, 32))
    x = jax.random.normal(key, (N, C, H, W), dtype=jnp.float32)

    mod = Interpolate(out_shape)
    y = jax.block_until_ready(mod(x))

    # Pure-JAX/NumPy reference (same legacy 'nearest' index rule as PyTorch).
    row_idx = (np.arange(out_shape[0]) * H) // out_shape[0]
    col_idx = (np.arange(out_shape[1]) * W) // out_shape[1]
    ref = np.asarray(x)[:, :, row_idx, :][:, :, :, col_idx]

    assert y.shape == (N, C, out_shape[0], out_shape[1]), y.shape
    np.testing.assert_array_equal(np.asarray(y), ref)
    print("KERNEL_OK")
</pallas_src>

<mosaic_0001>
module attributes {stable_mosaic.version = 11 : i64} {
  func.func @_interp_kernel(%arg0: i32, %arg1: memref<4x16x16xf32, #tpu.memory_space<vmem>>, %arg2: memref<4x32x32xf32, #tpu.memory_space<vmem>>) attributes {dimension_semantics = [#tpu.dimension_semantics<parallel>], iteration_bounds = array<i64: 2>, scalar_prefetch = 0 : i64, scratch_operands = 0 : i64, tpu.core_type = #tpu.core_type<tc>, window_params = [{transform_indices = @transform_0, window_bounds = array<i64: 4, 16, 16>}, {transform_indices = @transform_1, window_bounds = array<i64: 4, 32, 32>}]} {
    %c0 = arith.constant 0 : index
    %c0_0 = arith.constant 0 : index
    %c0_1 = arith.constant 0 : index
    %0 = vector.load %arg1[%c0, %c0_0, %c0_1] : memref<4x16x16xf32, #tpu.memory_space<vmem>>, vector<4x16x16xf32>
    %1 = tpu.iota {dimensions = array<i32: 1>} : vector<16x32xi32>
    %2 = tpu.iota {dimensions = array<i32: 0>} : vector<16x32xi32>
    %c32_i32 = arith.constant 32 : i32
    %3 = vector.broadcast %c32_i32 : i32 to vector<16x32xi32>
    %4 = arith.muli %2, %3 : vector<16x32xi32>
    %c16_i32 = arith.constant 16 : i32
    %5 = vector.broadcast %c16_i32 : i32 to vector<16x32xi32>
    %6 = arith.muli %1, %5 : vector<16x32xi32>
    %7 = arith.cmpi sle, %4, %6 : vector<16x32xi32>
    %c32_i32_2 = arith.constant 32 : i32
    %8 = vector.broadcast %c32_i32_2 : i32 to vector<16x32xi32>
    %9 = arith.addi %4, %8 : vector<16x32xi32>
    %10 = arith.cmpi slt, %6, %9 : vector<16x32xi32>
    %11 = arith.andi %7, %10 : vector<16x32xi1>
    %12 = arith.extui %11 : vector<16x32xi1> to vector<16x32xi32>
    %13 = arith.sitofp %12 : vector<16x32xi32> to vector<16x32xf32>
    %14 = vector.shape_cast %13 : vector<16x32xf32> to vector<1x16x32xf32>
    %15 = vector.shape_cast %14 : vector<1x16x32xf32> to vector<1x16x32xf32>
    %16 = vector.broadcast %15 : vector<1x16x32xf32> to vector<4x16x32xf32>
    "tpu.trace_start"() <{level = 10 : i32, message = "chw,cwv->chv"}> : () -> ()
    %cst = arith.constant dense<0.000000e+00> : vector<4x16x32xf32>
    %17 = tpu.matmul %0, %16, %cst {dimension_numbers = #tpu.dot_dimension_numbers<[2], [1], [1], [2], [0, 0, 0, 1, 1, 2], [0], [0]>} : vector<4x16x16xf32>, vector<4x16x32xf32>, vector<4x16x32xf32> -> vector<4x16x32xf32>
    "tpu.trace_stop"() : () -> ()
    %18 = tpu.iota {dimensions = array<i32: 0>} : vector<32x16xi32>
    %19 = tpu.iota {dimensions = array<i32: 1>} : vector<32x16xi32>
    %c32_i32_3 = arith.constant 32 : i32
    %20 = vector.broadcast %c32_i32_3 : i32 to vector<32x16xi32>
    %21 = arith.muli %19, %20 : vector<32x16xi32>
    %c16_i32_4 = arith.constant 16 : i32
    %22 = vector.broadcast %c16_i32_4 : i32 to vector<32x16xi32>
    %23 = arith.muli %18, %22 : vector<32x16xi32>
    %24 = arith.cmpi sle, %21, %23 : vector<32x16xi32>
    %c32_i32_5 = arith.constant 32 : i32
    %25 = vector.broadcast %c32_i32_5 : i32 to vector<32x16xi32>
    %26 = arith.addi %21, %25 : vector<32x16xi32>
    %27 = arith.cmpi slt, %23, %26 : vector<32x16xi32>
    %28 = arith.andi %24, %27 : vector<32x16xi1>
    %29 = arith.extui %28 : vector<32x16xi1> to vector<32x16xi32>
    %30 = arith.sitofp %29 : vector<32x16xi32> to vector<32x16xf32>
    %31 = vector.shape_cast %30 : vector<32x16xf32> to vector<1x32x16xf32>
    %32 = vector.shape_cast %31 : vector<1x32x16xf32> to vector<1x32x16xf32>
    %33 = vector.broadcast %32 : vector<1x32x16xf32> to vector<4x32x16xf32>
    "tpu.trace_start"() <{level = 10 : i32, message = "coh,chv->cov"}> : () -> ()
    %cst_6 = arith.constant dense<0.000000e+00> : vector<4x32x32xf32>
    %34 = tpu.matmul %33, %17, %cst_6 {dimension_numbers = #tpu.dot_dimension_numbers<[2], [1], [1], [2], [0, 0, 0, 1, 1, 2], [0], [0]>} : vector<4x32x16xf32>, vector<4x16x32xf32>, vector<4x32x32xf32> -> vector<4x32x32xf32>
    "tpu.trace_stop"() : () -> ()
    %c0_7 = arith.constant 0 : index
    %c0_8 = arith.constant 0 : index
    %c0_9 = arith.constant 0 : index
    %35 = vector.load %arg2[%c0_7, %c0_8, %c0_9] : memref<4x32x32xf32, #tpu.memory_space<vmem>>, vector<4x32x32xf32>
    tpu.vector_store %arg2[%c0_7, %c0_8, %c0_9], %34 {strides = array<i32>} : memref<4x32x32xf32, #tpu.memory_space<vmem>>, vector<4x32x32xf32>,
    return
  }
  func.func @transform_0(%arg0: i32) -> (i32, i32, i32) {
    %c0_i32 = arith.constant 0 : i32
    %c0_i32_0 = arith.constant 0 : i32
    %c0_i32_1 = arith.constant 0 : i32
    return %arg0, %c0_i32, %c0_i32_0 : i32, i32, i32
  }
  func.func @transform_1(%arg0: i32) -> (i32, i32, i32) {
    %c0_i32 = arith.constant 0 : i32
    %c0_i32_0 = arith.constant 0 : i32
    %c0_i32_1 = arith.constant 0 : i32
    return %arg0, %c0_i32, %c0_i32_0 : i32, i32, i32
  }
}

</mosaic_0001>

<bundles_post_ra>
// kernel: interpolate_nearest.1
= control target key start
LH: loop header
LB: loop body
LE: loop exit
PB: predicated region body
PF: predicated region fallthrough
CT: control target
= control target key end

     0   :  { %6 = vsyncpa [#allocation3], 0  ;;  %s992_s0 = inlined_call_operand.hbm [shape: f32[8,16,16], index: 0, kind: input, shape index: {}]   ;;  %s993_s1 = inlined_call_operand.hbm [shape: f32[8,32,32], index: 1, kind: output, shape index: {}]  }
   0x1   :  { %8 = vsyncpa [#allocation3 + $0x1], 0 }
   0x2   :  { %9 = vsyncpa [#allocation4], 0 }
   0x3   :  { %11 = vsyncpa [#allocation4 + $0x1], 0  ;;  %s772_s6 = smov 0   ;;  %s774_s7 = smov 0  }
   0x4   :  { %s776_s8 = smov 0   ;;  %s778_s9 = smov 0  }
   0x5 LB: > { %s793_s10 = sadd.s32 4294967295, %s754_s9   ;;  %s548_s11 = sadd.s32 4294967294, %s754_s9   ;;  %s754_s9 = sphi %s778_s9, %s1005_s9   ;;  %s750_s8 = sphi %s776_s8, %s1004_s8   ;;  %s746_s7 = sphi %s774_s7, %s1003_s7   ;;  %s742_s6 = sphi %s772_s6, %s1002_s6  }
   0x6   : > { %s797_s12 = sadd.s32 1, %s754_s9   ;;  %s24_s13 = sadd.s32 1, %s750_s8 }
   0x7   : > { %s21_s14 = ssub.s32 %s754_s9, %s797_s12  ;;  %p31_p0 = scmp.ne.s32.totalorder %s750_s8, %s746_s7 }
   0x8   : > { %p22_p1 = scmp.eq.s32.totalorder %s21_s14, 0  ;;  %p32_p2 = scmp.eq.s32.totalorder %s754_s9, 0 }
   0x9   : > { %p37_p3 = scmp.ne.s32.totalorder %s746_s7, %s742_s6  ;;  %p38_p4 = scmp.eq.s32.totalorder %s793_s10, 0 }
   0xa   : > { %s809_s15 = scalar_select %p22_p1, %s750_s8, %s24_s13  }
   0xb   : > { %p811_p5 = por %p32_p2, %p31_p0  ;;  %p815_p6 = por %p38_p4, %p37_p3 }
   0xc   : > { %p61_p7 = scmp.eq.s32.totalorder %s793_s10, 1  ;;  %p67_p8 = scmp.eq.s32.totalorder %s548_s11, 1 }
   0xd   : > { %p618_p10 = scmp.lt.s32.totalorder %s754_s9, 2  ;;  %s87_s20 = sand.u32 1, %s750_s8  }
   0xe   : > { %p822_p11 = por %p61_p7, %p31_p0  ;;  %p826_p12 = por %p67_p8, %p37_p3 }
   0xf   : > { %s603_s21 = sshll.u32 %s754_s9, 6  ;;  %s551_s22 = sshll.u32 %s87_s20, 6 }
  0x10   : > { %s97_s25 = scalar_lea.hbm %s992_s0, %s603_s21  ;;  %s91_s27 = scalar_lea.vmem [#allocation2], %s551_s22 }
  0x11   : > { %s98_s26 = sshll.u32 %s97_s25, 4  ;;  %s100_s28 = sshll.u32 %s91_s27, 4  ;;  %s99_s26 = int_to_ptr.hbm [resolvable:$true] %s98_s26  ;;  %s101_s28 = int_to_ptr.vmem [resolvable:$true] %s100_s28 }
  0x12   : > { %p837_p13 = pnand %p618_p10, %p811_p5  ;;  %p555_p0 = scmp.ge.s32.totalorder %s754_s9, 1 }
  0x13   : > { %p108_p1 = scmp.lt.s32.totalorder %s754_s9, 3  ;;  %s88_s30 = scalar_lea.sflag [#allocation3], %s87_s20 }
  0x14   : > { %s658_s2 = sshra.s32 %s99_s26, 4  ;;  %p662_p3 = pneg %p837_p13  ;;  %s659_s2 = int_to_ptr.hbm [resolvable:$true] %s658_s2 }
  0x15   : > { %s660_s3 = scalar_lea.hbm %s659_s2, 64  ;;  %s665_s11 = scalar_lea.hbm %s992_s0, 128 }
  0x16   : > { %p661_p2 = scmp.ne.s32.totalorder %s659_s2, %s660_s3  ;;  %p666_p5 = scmp.lt.s32.totalorder %s659_s2, %s992_s0 }
  0x17   : > { %p667_p8 = scmp.lt.s32.totalorder %s665_s11, %s660_s3 }
  0x18   : > { %p663_p4 = pnand %p662_p3, %p661_p2 }
  0x19   : > { %p668_p10 = por %p667_p8, %p666_p5 }
  0x1a   : > { %p664_p7 = pneg %p663_p4 }
  0x1c   : > { %p669_p9 = pnand %p668_p10, %p664_p7 }
  0x1e   : > { %672 = shalt.err (!%p669_p9)
}
  0x1f   : > { %s756_s16 = smov 128   ;;  %s757_s20 = smov 8  }
  0x20   : > { %613 = dma.hbm_to_vmem [thread:$0]  (!%p837_p13), %s99_s26, 1024, %s101_s28, %s88_s30, %s756_s16, %s756_s16, %s757_s20  }
  0x21   : > { %p109_p2 = pnand %p555_p0, %p108_p1 }
  0x22   : > { %s858_s21 = sand.u32 (!%p109_p2), 1, %s746_s7  }
  0x23   : > { %112 = sbr.rel (%p109_p2) target bundleno = 360 (0x168), region = 24  ;;  %s556_s22 = sshll.u32 (!%p109_p2), %s858_s21, 6 }
  0x24   : > { %s115_s23 = scalar_lea.sflag (!%p109_p2), [#allocation3], %s858_s21  ;;  %s862_s24 = scalar_lea.vmem (!%p109_p2), [#allocation2], %s556_s22 }
  0x28   : > { %733 = dma.done.wait (%p815_p6), %s115_s23, 1024  }
  0x29   : > { %735 = vsyncadd (%p815_p6), %s115_s23, 4294966272  ;;  %v148_v0 = vlaneseq  ;;  %v758_v10 = vmov 1.0   ;;  %v144_v11 = vld [vmem:[%s862_s24 + $0x20] sm:$0xff]  ;;  %vm168_vm6 = vcmask 130048   ;;  %v146_v12 = vld [vmem:[%s862_s24 + $0x30] sm:$0xff]  ;;  %v759_v29 = vmov 0.0  }
  0x2a   : > { %v140_v13 = vld [vmem:[%s862_s24] sm:$0xff]  ;;  %v142_v14 = vld [vmem:[%s862_s24 + $0x10] sm:$0xff]  ;;  %v145_v15 = vld [vmem:[%s862_s24 + $0x28] sm:$0xff]  ;;  %s557_s17 = sshll.u32 %s858_s21, 7  ;;  %s605_s26 = sshll.u32 %s793_s10, 7 }
  0x2b   : > { %v149_v1 = vand.u32 127, %v148_v0  ;;  %v868_v2 = vshrl.u32 %v148_v0, 7  ;;  %v147_v16 = vld [vmem:[%s862_s24 + $0x38] sm:$0xff]  ;;  %v141_v17 = vld [vmem:[%s862_s24 + $0x8] sm:$0xff]  ;;  %s924_s25 = scalar_lea.vmem [#allocation5], %s557_s17  ;;  %s471_s29 = scalar_lea.hbm %s993_s1, %s605_s26 }
  0x2c   : > { %v143_v18 = vld [vmem:[%s862_s24 + $0x18] sm:$0xff]  ;;  %s472_s30 = sshll.u32 %s924_s25, 4  ;;  %s474_s2 = sshll.u32 %s471_s29, 4  ;;  %s473_s30 = int_to_ptr.vmem [resolvable:$true] %s472_s30  ;;  %s475_s2 = int_to_ptr.hbm [resolvable:$true] %s474_s2 }
  0x2d   : > { %v871_v3 = vadd.s32 8, %v868_v2  ;;  %v155_v4 = vmul.u32 16, %v149_v1  ;;  %v153_v5 = vmul.u32 32, %v868_v2  ;;  %v287_v19 = vmul.u32 32, %v149_v1  ;;  %s459_s10 = scalar_lea.sflag [#allocation4], %s858_s21  ;;  %s702_s3 = sshra.s32 %s475_s2, 4  ;;  %s703_s3 = int_to_ptr.hbm [resolvable:$true] %s702_s3 }
  0x2e   : > { %v288_v22 = vmul.u32 16, %v868_v2  ;;  %v285_v33 = vadd.s32 16, %v868_v2  ;;  %v286_v36 = vadd.s32 24, %v868_v2  ;;  %s704_s4 = scalar_lea.hbm %s703_s3, 128  ;;  %s708_s13 = scalar_lea.hbm %s993_s1, 256 }
  0x2f   : > { %v154_v6 = vmul.u32 32, %v871_v3  ;;  %v158_v7 = vadd.s32 32, %v153_v5  ;;  %vm156_vm0 = vcmp.le.s32.totalorder %v153_v5, %v155_v4  ;;  %v296_v23 = vadd.s32 32, %v287_v19  ;;  %p705_p6 = scmp.ne.s32.totalorder %s703_s3, %s704_s4  ;;  %p709_p0 = scmp.lt.s32.totalorder %s703_s3, %s993_s1 }
  0x30   : > { %vm292_vm7 = vcmp.le.s32.totalorder %v287_v19, %v288_v22  ;;  %v289_v28 = vmul.u32 16, %v871_v3  ;;  %v290_v34 = vmul.u32 16, %v285_v33  ;;  %v291_v37 = vmul.u32 16, %v286_v36  ;;  %p710_p1 = scmp.lt.s32.totalorder %s708_s13, %s704_s4 }
  0x31   : > { %vm157_vm1 = vcmp.le.s32.totalorder %v154_v6, %v155_v4  ;;  %v159_v8 = vadd.s32 32, %v154_v6  ;;  %vm160_vm2 = vcmp.lt.s32.totalorder %v155_v4, %v158_v7  ;;  %vm297_vm8 = vcmp.lt.s32.totalorder %v288_v22, %v296_v23  ;;  %p706_p9 = pnand %p705_p6, %p822_p11 }
  0x32   : > { %vm875_vm4 = vmand %vm156_vm0, %vm160_vm2  ;;  %vm293_vm10 = vcmp.le.s32.totalorder %v287_v19, %v289_v28  ;;  %vm298_vm11 = vcmp.lt.s32.totalorder %v289_v28, %v296_v23  ;;  %vm294_vm13 = vcmp.le.s32.totalorder %v287_v19, %v290_v34  ;;  %vm299_vm14 = vcmp.lt.s32.totalorder %v290_v34, %v296_v23  ;;  %p711_p3 = por %p710_p1, %p709_p0 }
  0x33   : > { %vm161_vm3 = vcmp.lt.s32.totalorder %v155_v4, %v159_v8  ;;  %vm301_vm9 = vmand %vm292_vm7, %vm297_vm8  ;;  %vm295_vm0 = vcmp.le.s32.totalorder %v287_v19, %v291_v37  ;;  %p707_p13 = pneg %p706_p9 }
  0x34   : > { %vm163_vm5 = vmand %vm157_vm1, %vm161_vm3  ;;  %v576_v30 = vsel %vm301_vm9, 1.0, %v759_v29  ;;  %vm300_vm1 = vcmp.lt.s32.totalorder %v291_v37, %v296_v23  ;;  %vm441_vm3 = vcmask 261120  }
  0x35   : > { %568 = vmatpush.msk.msra.mxu2 %vm163_vm5, %v758_v10  ;;  %572 = vmatpush.msk.msra.mxu3 %vm163_vm5, %v758_v10  ;;  %vm302_vm12 = vmand %vm293_vm10, %vm298_vm11  ;;  %p712_p4 = pnand %p711_p3, %p707_p13 }
  0x36   : > { %560 = vmatpush.msk.msra.mxu0 %vm163_vm5, %v758_v10  ;;  %564 = vmatpush.msk.msra.mxu1 %vm163_vm5, %v758_v10  ;;  %v577_v35 = vsel %vm302_vm12, 1.0, %v759_v29  ;;  %vm303_vm15 = vmand %vm294_vm13, %vm299_vm14 }
  0x37   : > { %569 = vmatpush.msk.msra.mxu2 %vm875_vm4, %v758_v10  ;;  %573 = vmatpush.msk.msra.mxu3 %vm875_vm4, %v758_v10  ;;  %v578_v38 = vsel %vm303_vm15, 1.0, %v759_v29  ;;  %vm304_vm2 = vmand %vm295_vm0, %vm300_vm1 }
  0x38   : > { %570 = vmatmul.msk.f32.vlgmr.msra.gmra.mxu2 %vm168_vm6, %v144_v11  ;;  %574 = vmatmul.msk.f32.vlgmr.msra.gmra.mxu3 %vm168_vm6, %v146_v12  ;;  %v579_v39 = vsel %vm304_vm2, 1.0, %v759_v29 }
  0x39   : > { %561 = vmatpush.msk.msra.mxu0 %vm875_vm4, %v758_v10  ;;  %565 = vmatpush.msk.msra.mxu1 %vm875_vm4, %v758_v10 }
  0x3a   : > { %562 = vmatmul.msk.f32.vlgmr.msra.gmra.mxu0 %vm168_vm6, %v140_v13  ;;  %566 = vmatmul.msk.f32.vlgmr.msra.gmra.mxu1 %vm168_vm6, %v142_v14 }
  0x40   : > { %571 = vmatmul.msk.f32.gmra.mxu2 %vm168_vm6, %v145_v15  ;;  %575 = vmatmul.msk.f32.gmra.mxu3 %vm168_vm6, %v147_v16 }
  0x42   : > { %563 = vmatmul.msk.f32.gmra.mxu0 %vm168_vm6, %v141_v17  ;;  %567 = vmatmul.msk.f32.gmra.mxu1 %vm168_vm6, %v143_v18 }
  0xb7   : > { %v192_v20 = vpop.f32.mrf.mxu0  ;;  %v221_v21 = vpop.f32.mrf.mxu1 }
  0xbb   : > { %v250_v24 = vpop.f32.mrf.mxu2  ;;  %v279_v25 = vpop.f32.mrf.mxu3 }
  0xbf   : > { %v195_v26 = vpop.f32.mrf.mxu0  ;;  %v224_v27 = vpop.f32.mrf.mxu1 }
  0xc0   : > { %339 = vmatpush.msrb.mxu0 %v195_v26  ;;  %368 = vmatpush.msrb.mxu1 %v224_v27 }
  0xc2   : > { %340 = vmatpush.msrb.mxu0 %v192_v20  ;;  %369 = vmatpush.msrb.mxu1 %v221_v21 }
  0xc3   : > { %v253_v31 = vpop.f32.mrf.mxu2  ;;  %v282_v32 = vpop.f32.mrf.mxu3  ;;  %580 = vmatmul.msk.f32.vlgmr.msrb.gmra.mxu0 %vm168_vm6, %v576_v30  ;;  %584 = vmatmul.msk.f32.vlgmr.msrb.gmra.mxu1 %vm168_vm6, %v576_v30 }
  0xc4   : > { %397 = vmatpush.msrb.mxu2 %v253_v31  ;;  %426 = vmatpush.msrb.mxu3 %v282_v32 }
  0xc6   : > { %398 = vmatpush.msrb.mxu2 %v250_v24  ;;  %427 = vmatpush.msrb.mxu3 %v279_v25 }
  0xc7   : > { %588 = vmatmul.msk.f32.vlgmr.msrb.gmra.mxu2 %vm168_vm6, %v576_v30  ;;  %592 = vmatmul.msk.f32.vlgmr.msrb.gmra.mxu3 %vm168_vm6, %v576_v30 }
  0xcb   : > { %581 = vmatmul.msk.f32.gmra.mxu0 %vm168_vm6, %v577_v35  ;;  %585 = vmatmul.msk.f32.gmra.mxu1 %vm168_vm6, %v577_v35 }
  0xcf   : > { %589 = vmatmul.msk.f32.gmra.mxu2 %vm168_vm6, %v577_v35  ;;  %593 = vmatmul.msk.f32.gmra.mxu3 %vm168_vm6, %v577_v35 }
  0xd3   : > { %582 = vmatmul.msk.f32.gmra.mxu0 %vm168_vm6, %v578_v38  ;;  %586 = vmatmul.msk.f32.gmra.mxu1 %vm168_vm6, %v578_v38 }
  0xd7   : > { %590 = vmatmul.msk.f32.gmra.mxu2 %vm168_vm6, %v578_v38  ;;  %594 = vmatmul.msk.f32.gmra.mxu3 %vm168_vm6, %v578_v38 }
  0xdb   : > { %583 = vmatmul.msk.f32.gmra.mxu0 %vm168_vm6, %v579_v39  ;;  %587 = vmatmul.msk.f32.gmra.mxu1 %vm168_vm6, %v579_v39 }
  0xdf   : > { %591 = vmatmul.msk.f32.gmra.mxu2 %vm168_vm6, %v579_v39  ;;  %595 = vmatmul.msk.f32.gmra.mxu3 %vm168_vm6, %v579_v39 }
 0x140   : > { %v342_v40 = vpop.f32.mrf.mxu0  ;;  %v371_v41 = vpop.f32.mrf.mxu1 }
 0x141   : > { %442 = vst.msk [vmem:[%s924_s25] sm:$0xff] %vm441_vm3, %v342_v40 }
 0x142   : > { %446 = vst.msk [vmem:[%s924_s25 + $0x20] sm:$0xff] %vm441_vm3, %v371_v41 }
 0x148   : > { %v345_v42 = vpop.f32.mrf.mxu0  ;;  %v374_v43 = vpop.f32.mrf.mxu1 }
 0x149   : > { %443 = vst.msk [vmem:[%s924_s25 + $0x8] sm:$0xff] %vm441_vm3, %v345_v42 }
 0x14a   : > { %v400_v44 = vpop.f32.mrf.mxu2  ;;  %v429_v45 = vpop.f32.mrf.mxu3  ;;  %447 = vst.msk [vmem:[%s924_s25 + $0x28] sm:$0xff] %vm441_vm3, %v374_v43 }
 0x14b   : > { %450 = vst.msk [vmem:[%s924_s25 + $0x40] sm:$0xff] %vm441_vm3, %v400_v44 }
 0x14c   : > { %454 = vst.msk [vmem:[%s924_s25 + $0x60] sm:$0xff] %vm441_vm3, %v429_v45 }
 0x150   : > { %v348_v46 = vpop.f32.mrf.mxu0  ;;  %v377_v47 = vpop.f32.mrf.mxu1 }
 0x151   : > { %444 = vst.msk [vmem:[%s924_s25 + $0x10] sm:$0xff] %vm441_vm3, %v348_v46 }
 0x152   : > { %v403_v48 = vpop.f32.mrf.mxu2  ;;  %v432_v49 = vpop.f32.mrf.mxu3  ;;  %448 = vst.msk [vmem:[%s924_s25 + $0x30] sm:$0xff] %vm441_vm3, %v377_v47 }
 0x153   : > { %451 = vst.msk [vmem:[%s924_s25 + $0x48] sm:$0xff] %vm441_vm3, %v403_v48 }
 0x154   : > { %455 = vst.msk [vmem:[%s924_s25 + $0x68] sm:$0xff] %vm441_vm3, %v432_v49 }
 0x158   : > { %v351_v50 = vpop.f32.mrf.mxu0  ;;  %v380_v51 = vpop.f32.mrf.mxu1 }
 0x159   : > { %445 = vst.msk [vmem:[%s924_s25 + $0x18] sm:$0xff] %vm441_vm3, %v351_v50 }
 0x15a   : > { %v406_v52 = vpop.f32.mrf.mxu2  ;;  %v435_v53 = vpop.f32.mrf.mxu3  ;;  %449 = vst.msk [vmem:[%s924_s25 + $0x38] sm:$0xff] %vm441_vm3, %v380_v51 }
 0x15b   : > { %452 = vst.msk [vmem:[%s924_s25 + $0x50] sm:$0xff] %vm441_vm3, %v406_v52 }
 0x15c   : > { %456 = vst.msk [vmem:[%s924_s25 + $0x70] sm:$0xff] %vm441_vm3, %v435_v53 }
 0x162   : > { %v409_v54 = vpop.f32.mrf.mxu2  ;;  %v438_v55 = vpop.f32.mrf.mxu3 }
 0x163   : > { %453 = vst.msk [vmem:[%s924_s25 + $0x58] sm:$0xff] %vm441_vm3, %v409_v54 }
 0x164   : > { %457 = vst.msk [vmem:[%s924_s25 + $0x78] sm:$0xff] %vm441_vm3, %v438_v55 }
 0x165   : > { %715 = shalt.err (!%p712_p4)
}
 0x166   : > { %s760_s20 = smov 128   ;;  %s761_s21 = smov 8  }
 0x167   : > { %608 = dma.vmem_to_hbm [thread:$0]  (%p822_p11), %s473_s30, 2048, %s475_s2, %s459_s10, %s760_s20, %s760_s20, %s761_s21  }
 0x168 PF: > { %s489_s22 = sand.u32 1, %s742_s6   ;;  %p1001_p7 = scmp.ge.s32.totalorder %s754_s9, 2 }
 0x169   : > { %s490_s23 = scalar_lea.sflag [#allocation4], %s489_s22 }
 0x16a   : > { %p615_p5 = pnand %p1001_p7, %p826_p12 }
 0x16c   : > { %p616_p8 = pneg %p615_p5 }
 0x16e   : > { %737 = dma.done.wait (%p616_p8), %s490_s23, 2048  }
 0x16f   : > { %739 = vsyncadd (%p616_p8), %s490_s23, 4294965248  ;;  %p14_p10 = scmp.ge.s32.totalorder %s797_s12, 4   ;;  %s1002_s6 = smov %s746_s7 }
 0x170   : > { %s1003_s7 = smov %s750_s8  ;;  %s1004_s8 = smov %s809_s15 }
 0x171   : > { %s1005_s9 = smov %s797_s12  ;;  %16 = sbr.rel (!%p14_p10) target bundleno = 5 (0x5), region = 69 }
 0x176   :  { %496 = vsyncpa [#allocation3], 1 }
 0x177   :  { %498 = vsyncpa [#allocation3 + $0x1], 1 }
 0x178   :  { %499 = vsyncpa [#allocation4], 1 }
 0x179   :  { %501 = vsyncpa [#allocation4 + $0x1], 1 }

</bundles_post_ra>
